<compile_context>
chip_gen: v7x
topology: tpu7x:2x2x1
jax: 0.10.0
libtpu: 0.0.40
codegen_flags: <defaults>
</compile_context>

<pallas_src>
import functools
import math

import jax
import jax.numpy as jnp
from jax.experimental import pallas as pl
from jax.experimental.pallas import tpu as pltpu


def _round_up(x, m):
    return (x + m - 1) // m * m


# ---------------------------------------------------------------------------
# Small-graph path: the whole GCN fused into a single pallas_call (grid=()).
# ---------------------------------------------------------------------------
def _make_fused_kernel(num_layers, negative_slope):
    def kernel(adj_ref, x_ref, *rest):
        out_ref = rest[-1]
        wb = rest[:-1]
        adj = adj_ref[...]
        h = x_ref[...]
        for i in range(num_layers):
            w = wb[2 * i][...]
            b = wb[2 * i + 1][...]
            support = jnp.dot(h, w, preferred_element_type=jnp.float32)
            y = jnp.dot(adj, support, preferred_element_type=jnp.float32) + b
            if i < num_layers - 1:
                y = jnp.where(y > 0, y, negative_slope * y)
            # TODO(synk): F.dropout before the last layer is identity in eval
            # mode; training-mode dropout would need pltpu.prng_* masking.
            h = y
        out_ref[...] = h.astype(out_ref.dtype)

    return kernel


def _gcn_fused_small(params, x, adj, negative_slope):
    n = x.shape[0]
    n_pad = _round_up(n, 8)
    pad = n_pad - n
    x_p = jnp.pad(jnp.asarray(x, jnp.float32), ((0, pad), (0, 0)))
    adj_p = jnp.pad(jnp.asarray(adj, jnp.float32), ((0, pad), (0, pad)))

    flat = []
    for w, b in params:
        flat.append(jnp.asarray(w, jnp.float32))
        flat.append(jnp.asarray(b, jnp.float32).reshape(1, -1))
    d_out = params[-1][0].shape[1]

    kernel = _make_fused_kernel(len(params), negative_slope)
    out = pl.pallas_call(
        kernel,
        out_shape=jax.ShapeDtypeStruct((n_pad, d_out), jnp.float32),
    )(adj_p, x_p, *flat)
    return out[:n, :]


# ---------------------------------------------------------------------------
# Large-graph path.
# ---------------------------------------------------------------------------
def _choose_tiles_large(n):
    """Pick (n_pad, tq, tk) for the streamed-adjacency path."""
    tq = 512
    # Multiple of 1024 -> the "parallel" row-tile axis (n_pad // 512) is even,
    # so it shards evenly across v7x's two TensorCores.
    n_pad = _round_up(n, 1024)
    # Prefer dropping the reduction axis entirely (tk = n_pad) while the
    # double-buffered bf16 adjacency tile stays <= 16 MiB; otherwise stream
    # 2048-wide column tiles.
    if tq * n_pad * 2 * 2 <= 16 * 1024 * 1024:
        tk = n_pad
    else:
        n_pad = _round_up(n, 2048)
        tk = 2048
    return n_pad, tq, tk


def _projection_kernel(h_ref, w_ref, out_ref):
    out_ref[...] = jnp.dot(h_ref[...], w_ref[...],
                           preferred_element_type=jnp.float32
                           ).astype(out_ref.dtype)


def _project(h, w, out_dtype, tp):
    """support = h @ W, row-tiled."""
    n_pad, d_in = h.shape
    d_out = w.shape[1]
    return pl.pallas_call(
        _projection_kernel,
        out_shape=jax.ShapeDtypeStruct((n_pad, d_out), out_dtype),
        grid_spec=pltpu.PrefetchScalarGridSpec(
            num_scalar_prefetch=0,
            grid=(n_pad // tp,),
            in_specs=[
                pl.BlockSpec((tp, d_in), lambda i: (i, 0)),
                pl.BlockSpec((d_in, d_out), lambda i: (0, 0)),
            ],
            out_specs=pl.BlockSpec((tp, d_out), lambda i: (i, 0)),
        ),
        compiler_params=pltpu.CompilerParams(
            dimension_semantics=("parallel",)),
    )(h, w)


def _make_agg_kernel(tk, apply_leaky_relu, negative_slope):
    def kernel(adj_ref, sup_ref, b_ref, out_ref, acc_ref):
        k = pl.program_id(1)
        # `support` is fully VMEM-resident; slice this reduction step's rows.
        sup_tile = sup_ref[pl.ds(pl.multiple_of(k * tk, tk), tk), :]
        part = jnp.dot(adj_ref[...], sup_tile,
                       preferred_element_type=jnp.float32)

        @pl.when(k == 0)
        def _first():
            acc_ref[...] = part          # write-on-first-k: no zero-init pass

        @pl.when(k > 0)
        def _rest():
            acc_ref[...] += part

        @pl.when(k == pl.num_programs(1) - 1)
        def _finalize():
            y = acc_ref[...] + b_ref[...]
            if apply_leaky_relu:
                y = jnp.where(y > 0, y, negative_slope * y)
            out_ref[...] = y.astype(out_ref.dtype)

    return kernel


def _aggregate(adj_p, support, b, *, tq, tk, apply_leaky_relu,
               negative_slope, out_dtype):
    """out = leaky_relu?( adj @ support + b ), streaming adj in (tq, tk) tiles."""
    n_pad = adj_p.shape[0]
    d_out = support.shape[1]
    b2 = jnp.asarray(b, jnp.float32).reshape(1, d_out)
    grid = (n_pad // tq, n_pad // tk)
    kernel = _make_agg_kernel(tk, apply_leaky_relu, negative_slope)

    flops = 2 * n_pad * n_pad * d_out
    bytes_accessed = (adj_p.size * adj_p.dtype.itemsize
                      + support.size * support.dtype.itemsize
                      + b2.size * 4
                      + n_pad * d_out * jnp.dtype(out_dtype).itemsize)

    return pl.pallas_call(
        kernel,
        out_shape=jax.ShapeDtypeStruct((n_pad, d_out), out_dtype),
        grid_spec=pltpu.PrefetchScalarGridSpec(
            num_scalar_prefetch=0,
            grid=grid,
            in_specs=[
                pl.BlockSpec((tq, tk), lambda i, k: (i, k)),         # adj stream
                pl.BlockSpec((n_pad, d_out), lambda i, k: (0, 0)),   # support (resident)
                pl.BlockSpec((1, d_out), lambda i, k: (0, 0)),       # bias
            ],
            out_specs=pl.BlockSpec((tq, d_out), lambda i, k: (i, 0)),
            scratch_shapes=[pltpu.VMEM((tq, d_out), jnp.float32)],
        ),
        compiler_params=pltpu.CompilerParams(
            dimension_semantics=("parallel", "arbitrary"),
            vmem_limit_bytes=32 * 1024 * 1024,     # v5e default is 16 MiB
        ),
        cost_estimate=pl.CostEstimate(flops=flops, transcendentals=0,
                                      bytes_accessed=bytes_accessed),
    )(adj_p, support, b2)


def _gcn_tiled_large(params, x, adj, negative_slope, compute_dtype):
    n = x.shape[0]
    n_pad, tq, tk = _choose_tiles_large(n)
    pad = n_pad - n

    # Pad adjacency directly in the compute dtype (no f32 Np^2 intermediate).
    adj_p = jnp.pad(jnp.asarray(adj, compute_dtype), ((0, pad), (0, pad)))
    h = jnp.pad(jnp.asarray(x, jnp.float32), ((0, pad), (0, 0)))

    num_layers = len(params)
    for i, (w, b) in enumerate(params):
        is_last = i == num_layers - 1
        # TODO(synk): F.dropout before the last layer is identity in eval mode.
        support = _project(h, jnp.asarray(w, jnp.float32), compute_dtype, tq)
        h = _aggregate(adj_p, support, b,
                       tq=tq, tk=tk,
                       apply_leaky_relu=not is_last,
                       negative_slope=negative_slope,
                       out_dtype=jnp.float32 if is_last else compute_dtype)
    return h[:n, :]


# ---------------------------------------------------------------------------
# Full GCN forward (matches the PyTorch GCN.forward, inference mode)
# ---------------------------------------------------------------------------
def gcn_forward(params, x, adj, *, negative_slope=0.2,
                compute_dtype=jnp.bfloat16):
    n = x.shape[0]
    if n <= 512:
        return _gcn_fused_small(params, x, adj, negative_slope)
    return _gcn_tiled_large(params, x, adj, negative_slope, compute_dtype)


# ---------------------------------------------------------------------------
# Parameter init (matches GraphConvolution.reset_parameters: U(-stdv, stdv))
# ---------------------------------------------------------------------------
def init_gcn_params(key, channels):
    params = []
    for i in range(len(channels) - 1):
        in_f, out_f = channels[i], channels[i + 1]
        stdv = 1.0 / math.sqrt(out_f)
        key, kw, kb = jax.random.split(key, 3)
        w = jax.random.uniform(kw, (in_f, out_f), jnp.float32, -stdv, stdv)
        b = jax.random.uniform(kb, (out_f,), jnp.float32, -stdv, stdv)
        params.append((w, b))
    return params


# Pure-JAX reference mirroring the PyTorch forward (eval mode).
def gcn_reference(params, x, adj, negative_slope=0.2):
    h = jnp.asarray(x, jnp.float32)
    adj = jnp.asarray(adj, jnp.float32)
    num_layers = len(params)
    for i, (w, b) in enumerate(params):
        y = adj @ (h @ w) + b
        if i < num_layers - 1:
            y = jnp.where(y > 0, y, negative_slope * y)
        h = y
    return h


# ---------------------------------------------------------------------------
if __name__ == "__main__":
    NINPUT, NHID, NOUTPUT = 8, [32, 16], 4

    key = jax.random.PRNGKey(0)
    key, kp = jax.random.split(key)
    params = init_gcn_params(kp, [NINPUT] + NHID + [NOUTPUT])

    # ---- small-graph fused path (N = 16, all-f32, single pallas_call) ----
    N = 16
    key, kf = jax.random.split(key)
    x = jax.random.normal(kf, (N, NINPUT), dtype=jnp.float32)
    idx = jnp.arange(N)
    a = jnp.zeros((N, N), dtype=jnp.float32)
    a = a.at[idx, idx].set(1.0)                # self loops
    a = a.at[idx, (idx - 1) % N].set(1.0)      # ring edges
    a = a.at[idx, (idx + 1) % N].set(1.0)
    adj = a / jnp.sum(a, axis=1, keepdims=True)

    out = jax.block_until_ready(gcn_forward(params, x, adj))
    ref = gcn_reference(params, x, adj)
    assert out.shape == (N, NOUTPUT)
    assert bool(jnp.all(jnp.isfinite(out)))
    err = float(jnp.max(jnp.abs(out - ref)))
    assert err < 1e-3, f"small-path max abs error vs reference: {err}"

    # ---- large-graph tiled path (N = 600 -> n_pad 1024, tq=512, tk=1024) ----
    N2 = 600
    key, kf2, ka2 = jax.random.split(key, 3)
    x2 = jax.random.normal(kf2, (N2, NINPUT), dtype=jnp.float32)
    a2 = (jax.random.uniform(ka2, (N2, N2)) < 0.01).astype(jnp.float32)
    a2 = a2.at[jnp.arange(N2), jnp.arange(N2)].set(1.0)   # self loops
    adj2 = a2 / jnp.sum(a2, axis=1, keepdims=True)

    out2 = jax.block_until_ready(gcn_forward(params, x2, adj2))
    ref2 = gcn_reference(params, x2, adj2)
    assert out2.shape == (N2, NOUTPUT)
    assert bool(jnp.all(jnp.isfinite(out2)))
    err2 = float(jnp.max(jnp.abs(out2 - ref2)))
    scale2 = max(1.0, float(jnp.max(jnp.abs(ref2))))
    assert err2 / scale2 < 5e-2, f"large-path max abs error vs reference: {err2}"

    print("KERNEL_OK")
</pallas_src>

<mosaic_0001>
module attributes {stable_mosaic.version = 11 : i64} {
  func.func @kernel(%arg0: memref<16x16xf32, #tpu.memory_space<vmem>>, %arg1: memref<16x8xf32, #tpu.memory_space<vmem>>, %arg2: memref<8x32xf32, #tpu.memory_space<vmem>>, %arg3: memref<1x32xf32, #tpu.memory_space<vmem>>, %arg4: memref<32x16xf32, #tpu.memory_space<vmem>>, %arg5: memref<1x16xf32, #tpu.memory_space<vmem>>, %arg6: memref<16x4xf32, #tpu.memory_space<vmem>>, %arg7: memref<1x4xf32, #tpu.memory_space<vmem>>, %arg8: memref<16x4xf32, #tpu.memory_space<vmem>>) attributes {dimension_semantics = [], scalar_prefetch = 0 : i64, scratch_operands = 0 : i64, tpu.core_type = #tpu.core_type<tc>} {
    %c0 = arith.constant 0 : index
    %c0_0 = arith.constant 0 : index
    %0 = vector.load %arg0[%c0, %c0_0] : memref<16x16xf32, #tpu.memory_space<vmem>>, vector<16x16xf32>
    %c0_1 = arith.constant 0 : index
    %c0_2 = arith.constant 0 : index
    %1 = vector.load %arg1[%c0_1, %c0_2] : memref<16x8xf32, #tpu.memory_space<vmem>>, vector<16x8xf32>
    %c0_3 = arith.constant 0 : index
    %c0_4 = arith.constant 0 : index
    %2 = vector.load %arg2[%c0_3, %c0_4] : memref<8x32xf32, #tpu.memory_space<vmem>>, vector<8x32xf32>
    %c0_5 = arith.constant 0 : index
    %c0_6 = arith.constant 0 : index
    %3 = vector.load %arg3[%c0_5, %c0_6] : memref<1x32xf32, #tpu.memory_space<vmem>>, vector<1x32xf32>
    %cst = arith.constant dense<0.000000e+00> : vector<16x32xf32>
    %4 = tpu.matmul %1, %2, %cst {dimension_numbers = #tpu.dot_dimension_numbers<[1], [0], [0], [1], [0, 0, 1, 1], [], []>} : vector<16x8xf32>, vector<8x32xf32>, vector<16x32xf32> -> vector<16x32xf32>
    %cst_7 = arith.constant dense<0.000000e+00> : vector<16x32xf32>
    %5 = tpu.matmul %0, %4, %cst_7 {dimension_numbers = #tpu.dot_dimension_numbers<[1], [0], [0], [1], [0, 0, 1, 1], [], []>} : vector<16x16xf32>, vector<16x32xf32>, vector<16x32xf32> -> vector<16x32xf32>
    %6 = vector.broadcast %3 : vector<1x32xf32> to vector<16x32xf32>
    %7 = arith.addf %5, %6 : vector<16x32xf32>
    %cst_8 = arith.constant 0.000000e+00 : f32
    %8 = vector.broadcast %cst_8 : f32 to vector<16x32xf32>
    %9 = arith.cmpf ogt, %7, %8 : vector<16x32xf32>
    %cst_9 = arith.constant 2.000000e-01 : f32
    %10 = vector.broadcast %cst_9 : f32 to vector<16x32xf32>
    %11 = arith.mulf %10, %7 : vector<16x32xf32>
    %12 = arith.select %9, %7, %11 : vector<16x32xi1>, vector<16x32xf32>
    %c0_10 = arith.constant 0 : index
    %c0_11 = arith.constant 0 : index
    %13 = vector.load %arg4[%c0_10, %c0_11] : memref<32x16xf32, #tpu.memory_space<vmem>>, vector<32x16xf32>
    %c0_12 = arith.constant 0 : index
    %c0_13 = arith.constant 0 : index
    %14 = vector.load %arg5[%c0_12, %c0_13] : memref<1x16xf32, #tpu.memory_space<vmem>>, vector<1x16xf32>
    %cst_14 = arith.constant dense<0.000000e+00> : vector<16x16xf32>
    %15 = tpu.matmul %12, %13, %cst_14 {dimension_numbers = #tpu.dot_dimension_numbers<[1], [0], [0], [1], [0, 0, 1, 1], [], []>} : vector<16x32xf32>, vector<32x16xf32>, vector<16x16xf32> -> vector<16x16xf32>
    %cst_15 = arith.constant dense<0.000000e+00> : vector<16x16xf32>
    %16 = tpu.matmul %0, %15, %cst_15 {dimension_numbers = #tpu.dot_dimension_numbers<[1], [0], [0], [1], [0, 0, 1, 1], [], []>} : vector<16x16xf32>, vector<16x16xf32>, vector<16x16xf32> -> vector<16x16xf32>
    %17 = vector.broadcast %14 : vector<1x16xf32> to vector<16x16xf32>
    %18 = arith.addf %16, %17 : vector<16x16xf32>
    %cst_16 = arith.constant 0.000000e+00 : f32
    %19 = vector.broadcast %cst_16 : f32 to vector<16x16xf32>
    %20 = arith.cmpf ogt, %18, %19 : vector<16x16xf32>
    %cst_17 = arith.constant 2.000000e-01 : f32
    %21 = vector.broadcast %cst_17 : f32 to vector<16x16xf32>
    %22 = arith.mulf %21, %18 : vector<16x16xf32>
    %23 = arith.select %20, %18, %22 : vector<16x16xi1>, vector<16x16xf32>
    %c0_18 = arith.constant 0 : index
    %c0_19 = arith.constant 0 : index
    %24 = vector.load %arg6[%c0_18, %c0_19] : memref<16x4xf32, #tpu.memory_space<vmem>>, vector<16x4xf32>
    %c0_20 = arith.constant 0 : index
    %c0_21 = arith.constant 0 : index
    %25 = vector.load %arg7[%c0_20, %c0_21] : memref<1x4xf32, #tpu.memory_space<vmem>>, vector<1x4xf32>
    %cst_22 = arith.constant dense<0.000000e+00> : vector<16x4xf32>
    %26 = tpu.matmul %23, %24, %cst_22 {dimension_numbers = #tpu.dot_dimension_numbers<[1], [0], [0], [1], [0, 0, 1, 1], [], []>} : vector<16x16xf32>, vector<16x4xf32>, vector<16x4xf32> -> vector<16x4xf32>
    %cst_23 = arith.constant dense<0.000000e+00> : vector<16x4xf32>
    %27 = tpu.matmul %0, %26, %cst_23 {dimension_numbers = #tpu.dot_dimension_numbers<[1], [0], [0], [1], [0, 0, 1, 1], [], []>} : vector<16x16xf32>, vector<16x4xf32>, vector<16x4xf32> -> vector<16x4xf32>
    %28 = vector.broadcast %25 : vector<1x4xf32> to vector<16x4xf32>
    %29 = arith.addf %27, %28 : vector<16x4xf32>
    %c0_24 = arith.constant 0 : index
    %c0_25 = arith.constant 0 : index
    %30 = vector.load %arg8[%c0_24, %c0_25] : memref<16x4xf32, #tpu.memory_space<vmem>>, vector<16x4xf32>
    tpu.vector_store %arg8[%c0_24, %c0_25], %29 {strides = array<i32>} : memref<16x4xf32, #tpu.memory_space<vmem>>, vector<16x4xf32>,
    return
  }
}

</mosaic_0001>

<bundles_post_ra>
// kernel: tpu_custom_call.1
= control target key start
LH: loop header
LB: loop body
LE: loop exit
PB: predicated region body
PF: predicated region fallthrough
CT: control target
= control target key end

     0   :  { %vm35_vm0 = vcmask 64512   ;;  %vm123_vm1 = vcmask 130048   ;;  %vm216_vm4 = vcmask 261120   ;;  %vm550_vm7 = vcmask 31744   ;;  %s766_s2 = inlined_call_operand.vmem [shape: f32[8,32], index: 2, kind: input, shape index: {}]   ;;  %s767_s1 = inlined_call_operand.vmem [shape: f32[16,8], index: 1, kind: input, shape index: {}]   ;;  %s768_s0 = inlined_call_operand.vmem [shape: f32[16,16], index: 0, kind: input, shape index: {}]   ;;  %s769_s4 = inlined_call_operand.vmem [shape: f32[32,16], index: 4, kind: input, shape index: {}]   ;;  %s770_s3 = inlined_call_operand.vmem [shape: f32[1,32], index: 3, kind: input, shape index: {}]   ;;  %s771_s6 = inlined_call_operand.vmem [shape: f32[16,4], index: 6, kind: input, shape index: {}]   ;;  %s772_s5 = inlined_call_operand.vmem [shape: f32[1,16], index: 5, kind: input, shape index: {}]   ;;  %s773_s7 = inlined_call_operand.vmem [shape: f32[1,4], index: 7, kind: input, shape index: {}]   ;;  %s774_s8 = inlined_call_operand.vmem [shape: f32[16,4], index: 8, kind: output, shape index: {}]  }
   0x1   :  { %v33_v0 = vld [vmem:[%s766_s2] sm:$0xff]  ;;  %v32_v2 = vld [vmem:[%s767_s1 + $0x8] sm:$0xff]  ;;  %v213_v11 = vld [vmem:[%s769_s4 + $0x10] sm:$0xff] }
   0x2   :  { %v31_v1 = vld [vmem:[%s767_s1] sm:$0xff]  ;;  %597 = vmatprep.subr.mxu0 %v33_v0  ;;  %v30_v7 = vld [vmem:[%s768_s0 + $0x8] sm:$0xff]  ;;  %v214_v12 = vld [vmem:[%s769_s4 + $0x18] sm:$0xff] }
   0x3   :  { %599 = vmatprep.mubr.msk.f32.mxu0 %vm35_vm0, %v31_v1  ;;  %598 = vmatpush3.msra.mxu0 %v33_v0  ;;  %v29_v3 = vld [vmem:[%s768_s0] sm:$0xff]  ;;  %v212_v9 = vld [vmem:[%s769_s4 + $0x8] sm:$0xff]  ;;  %v649_v13 = vpack.c.bf16 %v214_v12, %v213_v11 }
   0x4   :  { %600 = vmatmul.mubr.msk.f32.vlgmr.msra.gmra.mrb[0].mxu0 %vm35_vm0, %v32_v2  ;;  %606 = vmatprep.mubr.msk.f32.mxu1 %vm123_vm1, %v29_v3  ;;  %v211_v8 = vld [vmem:[%s769_s4] sm:$0xff]  ;;  %v386_v27 = vld [vmem:[%s771_s6 + $0x8] sm:$0xff] }
   0x5   :  { %v645_v10 = vpack.c.bf16 %v212_v9, %v211_v8  ;;  %v559_v14 = vld [vmem:[%s770_s3] ss:$0 sm:$0xff] }
   0x6   :  { %v385_v26 = vld [vmem:[%s771_s6] sm:$0xff] }
   0x7   :  { %646 = vmatprep.subr.bf16.mxu0 %v645_v10  ;;  %v657_v28 = vpack.c.bf16 %v386_v27, %v385_v26  ;;  %v564_v29 = vld [vmem:[%s772_s5] ss:$0 sm:$0xff] }
   0x8   :  { %648 = vmatpush3.bf16.msra.mxu0 %v645_v10  ;;  %v569_v41 = vld [vmem:[%s773_s7] ss:$0 sm:$0xff] }
   0x9   :  { %650 = vmatprep.subr.bf16.mxu0 %v649_v13 }
   0xc   :  { %652 = vmatpush3.bf16.msra.mxu0 %v649_v13 }
  0xd7   :  { %v601_v4 = vpop.f32.mrb[0].mxu0 }
  0xd8   :  { %v108_v5 = vpop.f32.mrb[1].mxu0 }
  0xd9   :  { %v641_v6 = vpack.c.bf16 %v601_v4, %v108_v5 }
  0xdb   :  { %642 = vmatprep.subr.bf16.mxu1 %v641_v6 }
  0xdc   :  { %644 = vmatpush3.bf16.msra.mxu1 %v641_v6 }
  0xdf   :  { %607 = vmatmul.mubr.msk.f32.vlgmr.msra.gmra.mrb[0].mxu1 %vm123_vm1, %v30_v7 }
  0xe0   :  { %624 = vmatprep.mubr.msk.f32.mxu1 %vm123_vm1, %v29_v3 }
 0x1b2   :  { %v608_v15 = vpop.f32.mrb[0].mxu1 }
 0x1b3   :  { %v202_v16 = vadd.f32 %v608_v15, %v559_v14  ;;  %v196_v17 = vpop.f32.mrb[1].mxu1 }
 0x1b4   :  { %v197_v18 = vadd.f32 %v559_v14, %v196_v17 }
 0x1b5   :  { %v208_v19 = vmul.f32 0.2, %v202_v16  ;;  %vm206_vm2 = vcmp.gt.f32.partialorder %v202_v16, 0.0 }
 0x1b6   :  { %vm205_vm3 = vcmp.gt.f32.partialorder %v197_v18, 0.0  ;;  %v207_v20 = vmul.f32 0.2, %v197_v18 }
 0x1b7   :  { %v210_v22 = vsel %vm206_vm2, %v202_v16, %v208_v19 }
 0x1b8   :  { %v209_v21 = vsel %vm205_vm3, %v197_v18, %v207_v20 }
 0x1b9   :  { %617 = vmatprep.mubr.msk.f32.mxu0 %vm216_vm4, %v209_v21 }
 0x1ba   :  { %618 = vmatmul.mubr.msk.f32.vlgmr.msra.gmra.mrb[2].mxu0 %vm216_vm4, %v210_v22 }
 0x1bb   :  { %638 = vmatprep.mubr.msk.f32.mxu0 %vm123_vm1, %v29_v3 }
 0x28d   :  { %v619_v23 = vpop.f32.mrb[2].mxu0 }
 0x28e   :  { %v289_v24 = vpop.f32.mrb[3].mxu0 }
 0x28f   :  { %v653_v25 = vpack.c.bf16 %v619_v23, %v289_v24 }
 0x291   :  { %654 = vmatprep.subr.bf16.mxu1 %v653_v25 }
 0x292   :  { %656 = vmatpush3.bf16.msra.mxu1 %v653_v25 }
 0x293   :  { %658 = vmatprep.subr.bf16.mxu1 %v657_v28 }
 0x295   :  { %625 = vmatmul.mubr.msk.f32.vlgmr.msra.gmra.mrb[2].mxu1 %vm123_vm1, %v30_v7 }
 0x296   :  { %660 = vmatpush3.bf16.msra.mxu1 %v657_v28 }
 0x368   :  { %v626_v30 = vpop.f32.mrb[2].mxu1 }
 0x369   :  { %v376_v31 = vadd.f32 %v626_v30, %v564_v29  ;;  %v370_v32 = vpop.f32.mrb[3].mxu1 }
 0x36a   :  { %v371_v33 = vadd.f32 %v564_v29, %v370_v32 }
 0x36b   :  { %v382_v34 = vmul.f32 0.2, %v376_v31  ;;  %vm380_vm5 = vcmp.gt.f32.partialorder %v376_v31, 0.0 }
 0x36c   :  { %vm379_vm6 = vcmp.gt.f32.partialorder %v371_v33, 0.0  ;;  %v381_v35 = vmul.f32 0.2, %v371_v33 }
 0x36d   :  { %v384_v37 = vsel %vm380_vm5, %v376_v31, %v382_v34 }
 0x36e   :  { %v383_v36 = vsel %vm379_vm6, %v371_v33, %v381_v35 }
 0x36f   :  { %631 = vmatprep.mubr.msk.f32.mxu1 %vm123_vm1, %v383_v36 }
 0x370   :  { %632 = vmatmul.mubr.msk.f32.vlgmr.msra.gmra.mrb[4].mxu1 %vm123_vm1, %v384_v37 }
 0x443   :  { %v633_v38 = vpop.f32.mrb[4].mxu1 }
 0x444   :  { %v460_v39 = vpop.f32.mrb[5].mxu1 }
 0x445   :  { %v661_v40 = vpack.c.bf16 %v633_v38, %v460_v39 }
 0x447   :  { %662 = vmatprep.subr.bf16.mxu0 %v661_v40 }
 0x448   :  { %664 = vmatpush3.bf16.msra.mxu0 %v661_v40 }
 0x44b   :  { %639 = vmatmul.mubr.msk.f32.vlgmr.msra.gmra.mrb[4].mxu0 %vm123_vm1, %v30_v7 }
 0x51e   :  { %v640_v42 = vpop.f32.mrb[4].mxu0 }
 0x51f   :  { %v547_v43 = vadd.f32 %v640_v42, %v569_v41  ;;  %v541_v44 = vpop.f32.mrb[5].mxu0 }
 0x520   :  { %v542_v45 = vadd.f32 %v569_v41, %v541_v44 }
 0x521   :  { %552 = vst.msk [vmem:[%s774_s8 + $0x8] sm:$0xff] %vm550_vm7, %v547_v43 }
 0x522   :  { %551 = vst.msk [vmem:[%s774_s8] sm:$0xff] %vm550_vm7, %v542_v45 }

</bundles_post_ra>
